<compile_context>
chip_gen: v7x
topology: tpu7x:2x2x1
jax: 0.10.0
libtpu: 0.0.40
codegen_flags: <defaults>
</compile_context>

<pallas_src>
import jax
import jax.numpy as jnp
from jax import lax
from jax.experimental import pallas as pl
from jax.experimental.pallas import tpu as pltpu

EMBED_DIM = 8
VOCAB_SIZE = 5            # len('hello my name is lydia'.split())
MAX_SEQ_LEN = 5
NUM_LAYERS = 4
LANE = 128                # lane-dense padded width for the head output
BATCH = 8                 # sequences per pallas_call (grid axis, "parallel")


def transformer_kernel(tok_ref,                       # (B, S) int32, SMEM (scalar prefetch)
                       wemb_ref, pemb_ref,            # (V+1, E), (S, E)      VMEM
                       wqkv_ref, bqkv_ref,            # (L, E, 3E), (L, 1, 3E) VMEM
                       wh_ref, bh_ref,                # (E, 128), (1, 128)     VMEM
                       out_ref):                      # (S, 128)               VMEM
    b = pl.program_id(0)
    S, E, VP, L = MAX_SEQ_LEN, EMBED_DIM, VOCAB_SIZE + 1, NUM_LAYERS

    # --- fused embedding gather: one-hot (S, V+1) built from SMEM scalar reads ---
    row = lax.broadcasted_iota(jnp.int32, (S, VP), 0)
    col = lax.broadcasted_iota(jnp.int32, (S, VP), 1)
    onehot = jnp.zeros((S, VP), jnp.float32)
    for i in range(S):                                # static, S = 5
        t = tok_ref[b, i]                             # scalar read from SMEM
        onehot = onehot + jnp.where((row == i) & (col == t), 1.0, 0.0)
    x = (jnp.dot(onehot, wemb_ref[...], preferred_element_type=jnp.float32)
         + pemb_ref[...])                             # (S, E)

    # --- 4 Magic layers, fused QKV projection per layer ---
    qkt_dims = (((1,), (1,)), ((), ()))               # contract lane dims: Q @ K^T
    for l in range(L):                                # static, fully unrolled
        qkv = (jnp.dot(x, wqkv_ref[l], preferred_element_type=jnp.float32)
               + bqkv_ref[l])                         # (S, 3E)
        q = qkv[:, :E]
        k = qkv[:, E:2 * E]
        v = qkv[:, 2 * E:]
        attn = lax.dot_general(q, k, qkt_dims,
                               preferred_element_type=jnp.float32)   # (S, S)
        x = jnp.dot(attn, v, preferred_element_type=jnp.float32)     # (S, E)

    # --- prediction head, lane-dense (padded to 128) store ---
    out_ref[...] = (jnp.dot(x, wh_ref[...], preferred_element_type=jnp.float32)
                    + bh_ref[...])


def init_params(key):
    """Deterministic parameter init (PyTorch-style uniform(-1/sqrt(fan_in), ...))."""
    ks = list(jax.random.split(key, 16))

    def uni(k, shape, fan_in):
        bound = 1.0 / float(fan_in) ** 0.5
        return jax.random.uniform(k, shape, jnp.float32, -bound, bound)

    E, V, L, S = EMBED_DIM, VOCAB_SIZE, NUM_LAYERS, MAX_SEQ_LEN
    return {
        # embeddings: PyTorch nn.Embedding inits N(0,1)
        "word_embedding": jax.random.normal(ks[0], (V + 1, E), jnp.float32),
        "position_embedding": jax.random.normal(ks[1], (S, E), jnp.float32),
        # per-layer Magic weights, pre-transposed to (in, out)
        "wq": uni(ks[2], (L, E, E), E),
        "bq": uni(ks[3], (L, 1, E), E),
        "wk": uni(ks[4], (L, E, E), E),
        "bk": uni(ks[5], (L, 1, E), E),
        "wv": uni(ks[6], (L, E, E), E),
        "bv": uni(ks[7], (L, 1, E), E),
        # prediction head: E -> vocab_size
        "wh": uni(ks[8], (E, V), E),
        "bh": uni(ks[9], (1, V), E),
    }


def pack_params(params):
    """Fuse QKV weights and lane-pad the prediction head for the kernel."""
    wqkv = jnp.concatenate([params["wq"], params["wk"], params["wv"]], axis=-1)   # (L, E, 3E)
    bqkv = jnp.concatenate([params["bq"], params["bk"], params["bv"]], axis=-1)   # (L, 1, 3E)
    wh_pad = jnp.zeros((EMBED_DIM, LANE), jnp.float32).at[:, :VOCAB_SIZE].set(params["wh"])
    bh_pad = jnp.zeros((1, LANE), jnp.float32).at[:, :VOCAB_SIZE].set(params["bh"])
    return {
        "wemb": params["word_embedding"],
        "pemb": params["position_embedding"],
        "wqkv": wqkv,
        "bqkv": bqkv,
        "wh": wh_pad,
        "bh": bh_pad,
    }


def simple_transformer_forward(tokens, kparams):
    """tokens: (B, S) int32. Returns (B, S, vocab) logits."""
    B, S = tokens.shape
    VP, E, L = VOCAB_SIZE + 1, EMBED_DIM, NUM_LAYERS

    grid_spec = pltpu.PrefetchScalarGridSpec(
        num_scalar_prefetch=1,                 # tokens -> SMEM, visible to kernel + index_maps
        grid=(B,),
        in_specs=[
            pl.BlockSpec((VP, E), lambda b, tok: (0, 0)),                 # word embedding
            pl.BlockSpec((S, E), lambda b, tok: (0, 0)),                  # position embedding
            pl.BlockSpec((L, E, 3 * E), lambda b, tok: (0, 0, 0)),        # fused QKV weights
            pl.BlockSpec((L, 1, 3 * E), lambda b, tok: (0, 0, 0)),        # fused QKV biases
            pl.BlockSpec((E, LANE), lambda b, tok: (0, 0)),               # head weight (padded)
            pl.BlockSpec((1, LANE), lambda b, tok: (0, 0)),               # head bias (padded)
        ],
        out_specs=pl.BlockSpec((None, S, LANE), lambda b, tok: (b, 0, 0)),
    )
    out = pl.pallas_call(
        transformer_kernel,
        out_shape=jax.ShapeDtypeStruct((B, S, LANE), jnp.float32),
        grid_spec=grid_spec,
        compiler_params=pltpu.CompilerParams(dimension_semantics=("parallel",)),
    )(tokens, kparams["wemb"], kparams["pemb"], kparams["wqkv"], kparams["bqkv"],
      kparams["wh"], kparams["bh"])
    return out[:, :, :VOCAB_SIZE]


def reference_forward(tokens, params):
    """Pure-JAX reference (unfused, unpadded), batched over sequences."""
    def one_seq(seq):
        x = (params["word_embedding"][seq]
             + params["position_embedding"][jnp.arange(seq.shape[0])])
        for l in range(NUM_LAYERS):
            q = x @ params["wq"][l] + params["bq"][l]
            k = x @ params["wk"][l] + params["bk"][l]
            v = x @ params["wv"][l] + params["bv"][l]
            x = (q @ k.T) @ v
        return x @ params["wh"] + params["bh"]
    return jax.vmap(one_seq)(tokens)


if __name__ == "__main__":
    key = jax.random.PRNGKey(0)
    pkey, tkey = jax.random.split(key)

    params = init_params(pkey)
    kparams = pack_params(params)
    tokens = jax.random.randint(tkey, (BATCH, MAX_SEQ_LEN), 0, VOCAB_SIZE, dtype=jnp.int32)

    logits = simple_transformer_forward(tokens, kparams)
    logits = jax.block_until_ready(logits)

    ref = reference_forward(tokens, params)
    assert logits.shape == (BATCH, MAX_SEQ_LEN, VOCAB_SIZE)
    assert jnp.allclose(logits, ref, atol=1e-4, rtol=1e-4)
    print("KERNEL_OK")
</pallas_src>

<mosaic_0001>
module attributes {stable_mosaic.version = 11 : i64} {
  func.func @transformer_kernel(%arg0: i32, %arg1: memref<8x5xi32, #tpu.memory_space<smem>>, %arg2: memref<6x8xf32, #tpu.memory_space<vmem>>, %arg3: memref<5x8xf32, #tpu.memory_space<vmem>>, %arg4: memref<4x8x24xf32, #tpu.memory_space<vmem>>, %arg5: memref<4x1x24xf32, #tpu.memory_space<vmem>>, %arg6: memref<8x128xf32, #tpu.memory_space<vmem>>, %arg7: memref<1x128xf32, #tpu.memory_space<vmem>>, %arg8: memref<1x5x128xf32, #tpu.memory_space<vmem>>) attributes {dimension_semantics = [#tpu.dimension_semantics<parallel>], iteration_bounds = array<i64: 8>, scalar_prefetch = 1 : i64, scratch_operands = 0 : i64, tpu.core_type = #tpu.core_type<tc>, window_params = [{pipeline_mode = #tpu.pipeline_mode<synchronous>, transform_indices = @transform_0, window_bounds = array<i64: 6, 8>}, {pipeline_mode = #tpu.pipeline_mode<synchronous>, transform_indices = @transform_1, window_bounds = array<i64: 5, 8>}, {pipeline_mode = #tpu.pipeline_mode<synchronous>, transform_indices = @transform_2, window_bounds = array<i64: 4, 8, 24>}, {pipeline_mode = #tpu.pipeline_mode<synchronous>, transform_indices = @transform_3, window_bounds = array<i64: 4, 1, 24>}, {pipeline_mode = #tpu.pipeline_mode<synchronous>, transform_indices = @transform_4, window_bounds = array<i64: 8, 128>}, {pipeline_mode = #tpu.pipeline_mode<synchronous>, transform_indices = @transform_5, window_bounds = array<i64: 1, 128>}, {transform_indices = @transform_6, window_bounds = array<i64: 1, 5, 128>}]} {
    %0 = tpu.iota {dimensions = array<i32: 0>} : vector<5x6xi32>
    %1 = tpu.iota {dimensions = array<i32: 1>} : vector<5x6xi32>
    %cst = arith.constant 0.000000e+00 : f32
    %2 = vector.broadcast %cst : f32 to vector<5x6xf32>
    %3 = arith.index_cast %arg0 : i32 to index
    %c0 = arith.constant 0 : index
    %4 = memref.load %arg1[%3, %c0] : memref<8x5xi32, #tpu.memory_space<smem>>
    %c0_i32 = arith.constant 0 : i32
    %5 = vector.broadcast %c0_i32 : i32 to vector<5x6xi32>
    %6 = arith.cmpi eq, %0, %5 : vector<5x6xi32>
    %7 = vector.broadcast %4 : i32 to vector<5x6xi32>
    %8 = arith.cmpi eq, %1, %7 : vector<5x6xi32>
    %9 = arith.andi %6, %8 : vector<5x6xi1>
    %cst_0 = arith.constant 1.000000e+00 : f32
    %cst_1 = arith.constant 0.000000e+00 : f32
    %10 = vector.broadcast %cst_0 : f32 to vector<5x6xf32>
    %11 = vector.broadcast %cst_1 : f32 to vector<5x6xf32>
    %12 = arith.select %9, %10, %11 : vector<5x6xi1>, vector<5x6xf32>
    %13 = arith.addf %2, %12 : vector<5x6xf32>
    %14 = arith.index_cast %arg0 : i32 to index
    %c1 = arith.constant 1 : index
    %15 = memref.load %arg1[%14, %c1] : memref<8x5xi32, #tpu.memory_space<smem>>
    %c1_i32 = arith.constant 1 : i32
    %16 = vector.broadcast %c1_i32 : i32 to vector<5x6xi32>
    %17 = arith.cmpi eq, %0, %16 : vector<5x6xi32>
    %18 = vector.broadcast %15 : i32 to vector<5x6xi32>
    %19 = arith.cmpi eq, %1, %18 : vector<5x6xi32>
    %20 = arith.andi %17, %19 : vector<5x6xi1>
    %cst_2 = arith.constant 1.000000e+00 : f32
    %cst_3 = arith.constant 0.000000e+00 : f32
    %21 = vector.broadcast %cst_2 : f32 to vector<5x6xf32>
    %22 = vector.broadcast %cst_3 : f32 to vector<5x6xf32>
    %23 = arith.select %20, %21, %22 : vector<5x6xi1>, vector<5x6xf32>
    %24 = arith.addf %13, %23 : vector<5x6xf32>
    %25 = arith.index_cast %arg0 : i32 to index
    %c2 = arith.constant 2 : index
    %26 = memref.load %arg1[%25, %c2] : memref<8x5xi32, #tpu.memory_space<smem>>
    %c2_i32 = arith.constant 2 : i32
    %27 = vector.broadcast %c2_i32 : i32 to vector<5x6xi32>
    %28 = arith.cmpi eq, %0, %27 : vector<5x6xi32>
    %29 = vector.broadcast %26 : i32 to vector<5x6xi32>
    %30 = arith.cmpi eq, %1, %29 : vector<5x6xi32>
    %31 = arith.andi %28, %30 : vector<5x6xi1>
    %cst_4 = arith.constant 1.000000e+00 : f32
    %cst_5 = arith.constant 0.000000e+00 : f32
    %32 = vector.broadcast %cst_4 : f32 to vector<5x6xf32>
    %33 = vector.broadcast %cst_5 : f32 to vector<5x6xf32>
    %34 = arith.select %31, %32, %33 : vector<5x6xi1>, vector<5x6xf32>
    %35 = arith.addf %24, %34 : vector<5x6xf32>
    %36 = arith.index_cast %arg0 : i32 to index
    %c3 = arith.constant 3 : index
    %37 = memref.load %arg1[%36, %c3] : memref<8x5xi32, #tpu.memory_space<smem>>
    %c3_i32 = arith.constant 3 : i32
    %38 = vector.broadcast %c3_i32 : i32 to vector<5x6xi32>
    %39 = arith.cmpi eq, %0, %38 : vector<5x6xi32>
    %40 = vector.broadcast %37 : i32 to vector<5x6xi32>
    %41 = arith.cmpi eq, %1, %40 : vector<5x6xi32>
    %42 = arith.andi %39, %41 : vector<5x6xi1>
    %cst_6 = arith.constant 1.000000e+00 : f32
    %cst_7 = arith.constant 0.000000e+00 : f32
    %43 = vector.broadcast %cst_6 : f32 to vector<5x6xf32>
    %44 = vector.broadcast %cst_7 : f32 to vector<5x6xf32>
    %45 = arith.select %42, %43, %44 : vector<5x6xi1>, vector<5x6xf32>
    %46 = arith.addf %35, %45 : vector<5x6xf32>
    %47 = arith.index_cast %arg0 : i32 to index
    %c4 = arith.constant 4 : index
    %48 = memref.load %arg1[%47, %c4] : memref<8x5xi32, #tpu.memory_space<smem>>
    %c4_i32 = arith.constant 4 : i32
    %49 = vector.broadcast %c4_i32 : i32 to vector<5x6xi32>
    %50 = arith.cmpi eq, %0, %49 : vector<5x6xi32>
    %51 = vector.broadcast %48 : i32 to vector<5x6xi32>
    %52 = arith.cmpi eq, %1, %51 : vector<5x6xi32>
    %53 = arith.andi %50, %52 : vector<5x6xi1>
    %cst_8 = arith.constant 1.000000e+00 : f32
    %cst_9 = arith.constant 0.000000e+00 : f32
    %54 = vector.broadcast %cst_8 : f32 to vector<5x6xf32>
    %55 = vector.broadcast %cst_9 : f32 to vector<5x6xf32>
    %56 = arith.select %53, %54, %55 : vector<5x6xi1>, vector<5x6xf32>
    %57 = arith.addf %46, %56 : vector<5x6xf32>
    %c0_10 = arith.constant 0 : index
    %c0_11 = arith.constant 0 : index
    %58 = vector.load %arg2[%c0_10, %c0_11] : memref<6x8xf32, #tpu.memory_space<vmem>>, vector<6x8xf32>
    %cst_12 = arith.constant dense<0.000000e+00> : vector<5x8xf32>
    %59 = tpu.matmul %57, %58, %cst_12 {dimension_numbers = #tpu.dot_dimension_numbers<[1], [0], [0], [1], [0, 0, 1, 1], [], []>} : vector<5x6xf32>, vector<6x8xf32>, vector<5x8xf32> -> vector<5x8xf32>
    %c0_13 = arith.constant 0 : index
    %c0_14 = arith.constant 0 : index
    %60 = vector.load %arg3[%c0_13, %c0_14] : memref<5x8xf32, #tpu.memory_space<vmem>>, vector<5x8xf32>
    %61 = arith.addf %59, %60 : vector<5x8xf32>
    %c0_15 = arith.constant 0 : index
    %c0_16 = arith.constant 0 : index
    %c0_17 = arith.constant 0 : index
    %62 = vector.load %arg4[%c0_15, %c0_16, %c0_17] : memref<4x8x24xf32, #tpu.memory_space<vmem>>, vector<1x8x24xf32>
    %63 = vector.shape_cast %62 : vector<1x8x24xf32> to vector<8x24xf32>
    %cst_18 = arith.constant dense<0.000000e+00> : vector<5x24xf32>
    %64 = tpu.matmul %61, %63, %cst_18 {dimension_numbers = #tpu.dot_dimension_numbers<[1], [0], [0], [1], [0, 0, 1, 1], [], []>} : vector<5x8xf32>, vector<8x24xf32>, vector<5x24xf32> -> vector<5x24xf32>
    %c0_19 = arith.constant 0 : index
    %c0_20 = arith.constant 0 : index
    %c0_21 = arith.constant 0 : index
    %65 = vector.load %arg5[%c0_19, %c0_20, %c0_21] : memref<4x1x24xf32, #tpu.memory_space<vmem>>, vector<1x1x24xf32>
    %66 = vector.shape_cast %65 : vector<1x1x24xf32> to vector<1x24xf32>
    %67 = vector.broadcast %66 : vector<1x24xf32> to vector<5x24xf32>
    %68 = arith.addf %64, %67 : vector<5x24xf32>
    %69 = vector.extract_strided_slice %68 {offsets = [0, 0], sizes = [5, 8], strides = [1, 1]} : vector<5x24xf32> to vector<5x8xf32>
    %70 = vector.extract_strided_slice %68 {offsets = [0, 8], sizes = [5, 8], strides = [1, 1]} : vector<5x24xf32> to vector<5x8xf32>
    %71 = vector.extract_strided_slice %68 {offsets = [0, 16], sizes = [5, 8], strides = [1, 1]} : vector<5x24xf32> to vector<5x8xf32>
    %cst_22 = arith.constant dense<0.000000e+00> : vector<5x5xf32>
    %72 = tpu.matmul %69, %70, %cst_22 {dimension_numbers = #tpu.dot_dimension_numbers<[1], [1], [0], [0], [0, 0, 1, 0], [], []>} : vector<5x8xf32>, vector<5x8xf32>, vector<5x5xf32> -> vector<5x5xf32>
    %cst_23 = arith.constant dense<0.000000e+00> : vector<5x8xf32>
    %73 = tpu.matmul %72, %71, %cst_23 {dimension_numbers = #tpu.dot_dimension_numbers<[1], [0], [0], [1], [0, 0, 1, 1], [], []>} : vector<5x5xf32>, vector<5x8xf32>, vector<5x8xf32> -> vector<5x8xf32>
    %c1_24 = arith.constant 1 : index
    %c0_25 = arith.constant 0 : index
    %c0_26 = arith.constant 0 : index
    %74 = vector.load %arg4[%c1_24, %c0_25, %c0_26] : memref<4x8x24xf32, #tpu.memory_space<vmem>>, vector<1x8x24xf32>
    %75 = vector.shape_cast %74 : vector<1x8x24xf32> to vector<8x24xf32>
    %cst_27 = arith.constant dense<0.000000e+00> : vector<5x24xf32>
    %76 = tpu.matmul %73, %75, %cst_27 {dimension_numbers = #tpu.dot_dimension_numbers<[1], [0], [0], [1], [0, 0, 1, 1], [], []>} : vector<5x8xf32>, vector<8x24xf32>, vector<5x24xf32> -> vector<5x24xf32>
    %c1_28 = arith.constant 1 : index
    %c0_29 = arith.constant 0 : index
    %c0_30 = arith.constant 0 : index
    %77 = vector.load %arg5[%c1_28, %c0_29, %c0_30] : memref<4x1x24xf32, #tpu.memory_space<vmem>>, vector<1x1x24xf32>
    %78 = vector.shape_cast %77 : vector<1x1x24xf32> to vector<1x24xf32>
    %79 = vector.broadcast %78 : vector<1x24xf32> to vector<5x24xf32>
    %80 = arith.addf %76, %79 : vector<5x24xf32>
    %81 = vector.extract_strided_slice %80 {offsets = [0, 0], sizes = [5, 8], strides = [1, 1]} : vector<5x24xf32> to vector<5x8xf32>
    %82 = vector.extract_strided_slice %80 {offsets = [0, 8], sizes = [5, 8], strides = [1, 1]} : vector<5x24xf32> to vector<5x8xf32>
    %83 = vector.extract_strided_slice %80 {offsets = [0, 16], sizes = [5, 8], strides = [1, 1]} : vector<5x24xf32> to vector<5x8xf32>
    %cst_31 = arith.constant dense<0.000000e+00> : vector<5x5xf32>
    %84 = tpu.matmul %81, %82, %cst_31 {dimension_numbers = #tpu.dot_dimension_numbers<[1], [1], [0], [0], [0, 0, 1, 0], [], []>} : vector<5x8xf32>, vector<5x8xf32>, vector<5x5xf32> -> vector<5x5xf32>
    %cst_32 = arith.constant dense<0.000000e+00> : vector<5x8xf32>
    %85 = tpu.matmul %84, %83, %cst_32 {dimension_numbers = #tpu.dot_dimension_numbers<[1], [0], [0], [1], [0, 0, 1, 1], [], []>} : vector<5x5xf32>, vector<5x8xf32>, vector<5x8xf32> -> vector<5x8xf32>
    %c2_33 = arith.constant 2 : index
    %c0_34 = arith.constant 0 : index
    %c0_35 = arith.constant 0 : index
    %86 = vector.load %arg4[%c2_33, %c0_34, %c0_35] : memref<4x8x24xf32, #tpu.memory_space<vmem>>, vector<1x8x24xf32>
    %87 = vector.shape_cast %86 : vector<1x8x24xf32> to vector<8x24xf32>
    %cst_36 = arith.constant dense<0.000000e+00> : vector<5x24xf32>
    %88 = tpu.matmul %85, %87, %cst_36 {dimension_numbers = #tpu.dot_dimension_numbers<[1], [0], [0], [1], [0, 0, 1, 1], [], []>} : vector<5x8xf32>, vector<8x24xf32>, vector<5x24xf32> -> vector<5x24xf32>
    %c2_37 = arith.constant 2 : index
    %c0_38 = arith.constant 0 : index
    %c0_39 = arith.constant 0 : index
    %89 = vector.load %arg5[%c2_37, %c0_38, %c0_39] : memref<4x1x24xf32, #tpu.memory_space<vmem>>, vector<1x1x24xf32>
    %90 = vector.shape_cast %89 : vector<1x1x24xf32> to vector<1x24xf32>
    %91 = vector.broadcast %90 : vector<1x24xf32> to vector<5x24xf32>
    %92 = arith.addf %88, %91 : vector<5x24xf32>
    %93 = vector.extract_strided_slice %92 {offsets = [0, 0], sizes = [5, 8], strides = [1, 1]} : vector<5x24xf32> to vector<5x8xf32>
    %94 = vector.extract_strided_slice %92 {offsets = [0, 8], sizes = [5, 8], strides = [1, 1]} : vector<5x24xf32> to vector<5x8xf32>
    %95 = vector.extract_strided_slice %92 {offsets = [0, 16], sizes = [5, 8], strides = [1, 1]} : vector<5x24xf32> to vector<5x8xf32>
    %cst_40 = arith.constant dense<0.000000e+00> : vector<5x5xf32>
    %96 = tpu.matmul %93, %94, %cst_40 {dimension_numbers = #tpu.dot_dimension_numbers<[1], [1], [0], [0], [0, 0, 1, 0], [], []>} : vector<5x8xf32>, vector<5x8xf32>, vector<5x5xf32> -> vector<5x5xf32>
    %cst_41 = arith.constant dense<0.000000e+00> : vector<5x8xf32>
    %97 = tpu.matmul %96, %95, %cst_41 {dimension_numbers = #tpu.dot_dimension_numbers<[1], [0], [0], [1], [0, 0, 1, 1], [], []>} : vector<5x5xf32>, vector<5x8xf32>, vector<5x8xf32> -> vector<5x8xf32>
    %c3_42 = arith.constant 3 : index
    %c0_43 = arith.constant 0 : index
    %c0_44 = arith.constant 0 : index
    %98 = vector.load %arg4[%c3_42, %c0_43, %c0_44] : memref<4x8x24xf32, #tpu.memory_space<vmem>>, vector<1x8x24xf32>
    %99 = vector.shape_cast %98 : vector<1x8x24xf32> to vector<8x24xf32>
    %cst_45 = arith.constant dense<0.000000e+00> : vector<5x24xf32>
    %100 = tpu.matmul %97, %99, %cst_45 {dimension_numbers = #tpu.dot_dimension_numbers<[1], [0], [0], [1], [0, 0, 1, 1], [], []>} : vector<5x8xf32>, vector<8x24xf32>, vector<5x24xf32> -> vector<5x24xf32>
    %c3_46 = arith.constant 3 : index
    %c0_47 = arith.constant 0 : index
    %c0_48 = arith.constant 0 : index
    %101 = vector.load %arg5[%c3_46, %c0_47, %c0_48] : memref<4x1x24xf32, #tpu.memory_space<vmem>>, vector<1x1x24xf32>
    %102 = vector.shape_cast %101 : vector<1x1x24xf32> to vector<1x24xf32>
    %103 = vector.broadcast %102 : vector<1x24xf32> to vector<5x24xf32>
    %104 = arith.addf %100, %103 : vector<5x24xf32>
    %105 = vector.extract_strided_slice %104 {offsets = [0, 0], sizes = [5, 8], strides = [1, 1]} : vector<5x24xf32> to vector<5x8xf32>
    %106 = vector.extract_strided_slice %104 {offsets = [0, 8], sizes = [5, 8], strides = [1, 1]} : vector<5x24xf32> to vector<5x8xf32>
    %107 = vector.extract_strided_slice %104 {offsets = [0, 16], sizes = [5, 8], strides = [1, 1]} : vector<5x24xf32> to vector<5x8xf32>
    %cst_49 = arith.constant dense<0.000000e+00> : vector<5x5xf32>
    %108 = tpu.matmul %105, %106, %cst_49 {dimension_numbers = #tpu.dot_dimension_numbers<[1], [1], [0], [0], [0, 0, 1, 0], [], []>} : vector<5x8xf32>, vector<5x8xf32>, vector<5x5xf32> -> vector<5x5xf32>
    %cst_50 = arith.constant dense<0.000000e+00> : vector<5x8xf32>
    %109 = tpu.matmul %108, %107, %cst_50 {dimension_numbers = #tpu.dot_dimension_numbers<[1], [0], [0], [1], [0, 0, 1, 1], [], []>} : vector<5x5xf32>, vector<5x8xf32>, vector<5x8xf32> -> vector<5x8xf32>
    %c0_51 = arith.constant 0 : index
    %c0_52 = arith.constant 0 : index
    %110 = vector.load %arg6[%c0_51, %c0_52] : memref<8x128xf32, #tpu.memory_space<vmem>>, vector<8x128xf32>
    %cst_53 = arith.constant dense<0.000000e+00> : vector<5x128xf32>
    %111 = tpu.matmul %109, %110, %cst_53 {dimension_numbers = #tpu.dot_dimension_numbers<[1], [0], [0], [1], [0, 0, 1, 1], [], []>} : vector<5x8xf32>, vector<8x128xf32>, vector<5x128xf32> -> vector<5x128xf32>
    %c0_54 = arith.constant 0 : index
    %c0_55 = arith.constant 0 : index
    %112 = vector.load %arg7[%c0_54, %c0_55] : memref<1x128xf32, #tpu.memory_space<vmem>>, vector<1x128xf32>
    %113 = vector.broadcast %112 : vector<1x128xf32> to vector<5x128xf32>
    %114 = arith.addf %111, %113 : vector<5x128xf32>
    %c0_56 = arith.constant 0 : index
    %c0_57 = arith.constant 0 : index
    %c0_58 = arith.constant 0 : index
    %115 = vector.load %arg8[%c0_56, %c0_57, %c0_58] : memref<1x5x128xf32, #tpu.memory_space<vmem>>, vector<1x5x128xf32>
    %116 = vector.shape_cast %115 : vector<1x5x128xf32> to vector<5x128xf32>
    %117 = vector.shape_cast %114 : vector<5x128xf32> to vector<1x5x128xf32>
    tpu.vector_store %arg8[%c0_56, %c0_57, %c0_58], %117 {strides = array<i32>} : memref<1x5x128xf32, #tpu.memory_space<vmem>>, vector<1x5x128xf32>,
    return
  }
  func.func @transform_0(%arg0: i32, %arg1: memref<8x5xi32, #tpu.memory_space<smem>>) -> (i32, i32) {
    %c0_i32 = arith.constant 0 : i32
    %c0_i32_0 = arith.constant 0 : i32
    %c0_i32_1 = arith.constant 0 : i32
    return %c0_i32, %c0_i32_0 : i32, i32
  }
  func.func @transform_1(%arg0: i32, %arg1: memref<8x5xi32, #tpu.memory_space<smem>>) -> (i32, i32) {
    %c0_i32 = arith.constant 0 : i32
    %c0_i32_0 = arith.constant 0 : i32
    %c0_i32_1 = arith.constant 0 : i32
    return %c0_i32, %c0_i32_0 : i32, i32
  }
  func.func @transform_2(%arg0: i32, %arg1: memref<8x5xi32, #tpu.memory_space<smem>>) -> (i32, i32, i32) {
    %c0_i32 = arith.constant 0 : i32
    %c0_i32_0 = arith.constant 0 : i32
    %c0_i32_1 = arith.constant 0 : i32
    %c0_i32_2 = arith.constant 0 : i32
    return %c0_i32, %c0_i32_0, %c0_i32_1 : i32, i32, i32
  }
  func.func @transform_3(%arg0: i32, %arg1: memref<8x5xi32, #tpu.memory_space<smem>>) -> (i32, i32, i32) {
    %c0_i32 = arith.constant 0 : i32
    %c0_i32_0 = arith.constant 0 : i32
    %c0_i32_1 = arith.constant 0 : i32
    %c0_i32_2 = arith.constant 0 : i32
    return %c0_i32, %c0_i32_0, %c0_i32_1 : i32, i32, i32
  }
  func.func @transform_4(%arg0: i32, %arg1: memref<8x5xi32, #tpu.memory_space<smem>>) -> (i32, i32) {
    %c0_i32 = arith.constant 0 : i32
    %c0_i32_0 = arith.constant 0 : i32
    %c0_i32_1 = arith.constant 0 : i32
    return %c0_i32, %c0_i32_0 : i32, i32
  }
  func.func @transform_5(%arg0: i32, %arg1: memref<8x5xi32, #tpu.memory_space<smem>>) -> (i32, i32) {
    %c0_i32 = arith.constant 0 : i32
    %c0_i32_0 = arith.constant 0 : i32
    %c0_i32_1 = arith.constant 0 : i32
    return %c0_i32, %c0_i32_0 : i32, i32
  }
  func.func @transform_6(%arg0: i32, %arg1: memref<8x5xi32, #tpu.memory_space<smem>>) -> (i32, i32, i32) {
    %c0_i32 = arith.constant 0 : i32
    %c0_i32_0 = arith.constant 0 : i32
    %c0_i32_1 = arith.constant 0 : i32
    return %arg0, %c0_i32, %c0_i32_0 : i32, i32, i32
  }
}

</mosaic_0001>

<bundles_post_ra>
// kernel: tpu_custom_call.1
= control target key start
LH: loop header
LB: loop body
LE: loop exit
PB: predicated region body
PF: predicated region fallthrough
CT: control target
= control target key end

     0   :  { %s2075_s0 = inlined_call_operand.hbm [shape: s32[8,5], index: 0, kind: input, shape index: {}]   ;;  %s2076_s1 = inlined_call_operand.hbm [shape: f32[6,8], index: 1, kind: input, shape index: {}]   ;;  %s2077_s2 = inlined_call_operand.hbm [shape: f32[5,8], index: 2, kind: input, shape index: {}]   ;;  %s2078_s3 = inlined_call_operand.hbm [shape: f32[4,8,24], index: 3, kind: input, shape index: {}]   ;;  %s2079_s4 = inlined_call_operand.vmem [shape: f32[4,1,24], index: 4, kind: input, shape index: {}]   ;;  %s2080_s5 = inlined_call_operand.vmem [shape: f32[8,128], index: 5, kind: input, shape index: {}]   ;;  %s2081_s6 = inlined_call_operand.vmem [shape: f32[1,128], index: 6, kind: input, shape index: {}]   ;;  %s2082_s7 = inlined_call_operand.vmem [shape: f32[8,5,128], index: 7, kind: output, shape index: {}]  }
   0x1   :  { %s1691_s26 = scalar_lea.hbm %s2075_s0, 128 }
   0x2   :  { %p1692_p0 = scmp.ne.s32.totalorder %s2075_s0, %s1691_s26  ;;  %p1695_p1 = scmp.lt.u32.totalorder %s1691_s26, %s2075_s0 }
   0x4   :  { %p1697_p2 = pnand %p1695_p1, %p1692_p0 }
   0x6   :  { %1700 = shalt.err (!%p1697_p2)  }
   0x7   :  { %s1803_s8 = smov [#allocation3]  }
   0x8   :  { %13 = dma.hbm_to_smem %s2075_s0, 128, %s1803_s8, [#allocation2] }
   0x9   :  { %1789 = dma.done.wait [#allocation2], 128 }
   0xa   :  { %1790 = vsyncadd [#allocation2], 4294967168 }
   0xb   :  { %15 = sfence }
   0xc   :  { %16 = vsyncpa [#allocation5], 0 }
   0xd   :  { %17 = vsyncpa [#allocation7], 0  ;;  %s1865_s11 = smov 0  }
   0xe LB: > { %s1871_s12 = sadd.s32 4294967295, %s1801_s11   ;;  %p1504_p3 = scmp.ge.s32.totalorder %s1801_s11, 1  ;;  %s1801_s11 = sphi %s1865_s11, %s23_s11  }
   0xf   : > { %p180_p4 = scmp.lt.s32.totalorder %s1801_s11, 9  ;;  %p2083_p5 = scmp.eq.s32.totalorder %s1871_s12, 0 }
  0x10   : > { %s1804_s0 = smov [#allocation6]   ;;  %s1805_s15 = smov [#allocation4]  }
  0x11   : > { %s204_s13 = sshll.u32 %s1804_s0, 4  ;;  %p1876_p6 = pnand %p1504_p3, %p180_p4  ;;  %s205_s13 = int_to_ptr.vmem [resolvable:$true] %s204_s13 }
  0x12   : > { %s193_s16 = sshll.u32 %s1805_s15, 4  ;;  %s1806_s17 = smov [#allocation8]   ;;  %s1888_s16 = int_to_ptr.vmem [resolvable:$true] %s193_s16 }
  0x13   : > { %s2085_s14 = scalar_select %p1876_p6, 1, 0 }
  0x14   : > { %p1657_p7 = pneg %p1876_p6  ;;  %s214_s18 = sshll.u32 %s1806_s17, 4  ;;  %s1890_s18 = int_to_ptr.vmem [resolvable:$true] %s214_s18 }
  0x15   : > { %s1701_s22 = scalar_lea.hbm %s2077_s2, 128 }
  0x16   : > { %p1884_p8 = pnand %p2083_p5, %p1657_p7  ;;  %p1702_p9 = scmp.ne.s32.totalorder %s2077_s2, %s1701_s22 }
  0x17   : > { %p1708_p13 = scmp.lt.u32.totalorder %s1701_s22, %s2077_s2 }
  0x18   : > { %p1900_p10 = pneg %p1884_p8 }
  0x1a   : > { %p1704_p11 = pnand %p1900_p10, %p1702_p9 }
  0x1c   : > { %p1705_p12 = pneg %p1704_p11 }
  0x1e   : > { %p1710_p0 = pnand %p1708_p13, %p1705_p12 }
  0x20   : > { %1713 = shalt.err (!%p1710_p0)
}
  0x21   : > { %s1714_s28 = scalar_lea.vmem %s205_s13, 128  ;;  %p1722_p4 = scmp.lt.s32.totalorder %s205_s13, %s205_s13 }
  0x22   : > { %p1715_p1 = scmp.ne.s32.totalorder %s205_s13, %s1714_s28  ;;  %p1723_p7 = scmp.lt.s32.totalorder %s1714_s28, %s1714_s28 }
  0x24   : > { %p1717_p2 = pnand %p1715_p1, %p1900_p10  ;;  %p1724_p5 = por %p1723_p7, %p1722_p4 }
  0x26   : > { %p1718_p3 = pneg %p1717_p2 }
  0x28   : > { %p1725_p6 = pnand %p1724_p5, %p1718_p3 }
  0x2a   : > { %1728 = shalt.err (!%p1725_p6)
}
  0x2b   : > { %1663 = dma.hbm_to_vmem [thread:$0]  (!%p1884_p8), %s2077_s2, 128, %s205_s13, [#allocation7]  }
  0x2c   : > { %s1729_s10 = scalar_lea.hbm %s2076_s1, 128 }
  0x2d   : > { %p1730_p9 = scmp.ne.s32.totalorder %s2076_s1, %s1729_s10  ;;  %p1736_p5 = scmp.lt.u32.totalorder %s1729_s10, %s2076_s1 }
  0x2f   : > { %p1732_p11 = pnand %p1730_p9, %p1900_p10 }
  0x31   : > { %p1733_p12 = pneg %p1732_p11 }
  0x33   : > { %p1738_p6 = pnand %p1736_p5, %p1733_p12 }
  0x35   : > { %1741 = shalt.err (!%p1738_p6)
}
  0x36   : > { %s1742_s13 = scalar_lea.vmem %s1888_s16, 128  ;;  %p1750_p2 = scmp.lt.s32.totalorder %s1888_s16, %s1888_s16 }
  0x37   : > { %p1743_p13 = scmp.ne.s32.totalorder %s1888_s16, %s1742_s13  ;;  %p1751_p3 = scmp.lt.s32.totalorder %s1742_s13, %s1742_s13 }
  0x39   : > { %p1745_p0 = pnand %p1743_p13, %p1900_p10  ;;  %p1752_p4 = por %p1751_p3, %p1750_p2 }
  0x3b   : > { %p1746_p1 = pneg %p1745_p0 }
  0x3d   : > { %p1753_p7 = pnand %p1752_p4, %p1746_p1 }
  0x3f   : > { %1756 = shalt.err (!%p1753_p7)
}
  0x40   : > { %1660 = dma.hbm_to_vmem [thread:$0]  (!%p1884_p8), %s2076_s1, 128, %s1888_s16, [#allocation5]  }
  0x41   : > { %s1757_s26 = scalar_lea.hbm %s2078_s3, 512 }
  0x42   : > { %p1758_p9 = scmp.ne.s32.totalorder %s2078_s3, %s1757_s26  ;;  %p1764_p5 = scmp.lt.u32.totalorder %s1757_s26, %s2078_s3 }
  0x44   : > { %p1760_p11 = pnand %p1758_p9, %p1900_p10 }
  0x46   : > { %p1761_p12 = pneg %p1760_p11 }
  0x48   : > { %p1766_p6 = pnand %p1764_p5, %p1761_p12 }
  0x4a   : > { %1769 = shalt.err (!%p1766_p6)
}
  0x4b   : > { %s1770_s16 = scalar_lea.vmem %s1890_s18, 512  ;;  %p1778_p2 = scmp.lt.s32.totalorder %s1890_s18, %s1890_s18 }
  0x4c   : > { %p1771_p13 = scmp.ne.s32.totalorder %s1890_s18, %s1770_s16  ;;  %p1779_p3 = scmp.lt.s32.totalorder %s1770_s16, %s1770_s16 }
  0x4e   : > { %p1773_p0 = pnand %p1771_p13, %p1900_p10  ;;  %p1780_p4 = por %p1779_p3, %p1778_p2 }
  0x50   : > { %p1774_p1 = pneg %p1773_p0 }
  0x52   : > { %p1781_p7 = pnand %p1780_p4, %p1774_p1 }
  0x54   : > { %1784 = shalt.err (!%p1781_p7)
}
  0x55   : > { %s1807_s8 = smov 128   ;;  %s1808_s9 = smov 8  }
  0x56   : > { %1666 = dma.hbm_to_vmem [thread:$0]  (!%p1884_p8), %s2078_s3, 512, %s1890_s18, [#allocation7], %s1807_s8, %s1807_s8, %s1808_s9  }
  0x57   : > { %p2088_p9 = scmp.ne.s32.totalorder %s2085_s14, 0 }
  0x58   : > { %p2089_p10 = scmp.eq.s32.totalorder (!%p2088_p9), %s1871_s12, 0 }
  0x59   : > { %239 = sbr.rel (%p2088_p9) target bundleno = 3573 (0xdf5), region = 44 }
  0x60   : > { %1792 = dma.done.wait (%p2089_p10), [#allocation5], 128   ;;  %p2090_p11 = pmov %p2089_p10 }
  0x61   : > { %p2091_p12 = pmov %p2089_p10 }
  0x62   : > { %1794 = vsyncadd (%p2090_p11), [#allocation5], 4294967168 }
  0x63   : > { %1796 = dma.done.wait (%p2091_p12), [#allocation7], 640   ;;  %p2092_p5 = pmov %p2089_p10 }
  0x64   : > { %v275_v0 = vlaneseq  ;;  %s1513_s19 = sshll.u32 %s1871_s12, 7  ;;  %v1809_v1 = vmov 0.0   ;;  %vm1810_vm0 = vmmov 0   ;;  %vm325_vm1 = vcmask 1045504   ;;  %v319_v4 = vld [vmem:[#allocation4] sm:$0x3f] }
  0x65   : > { %1798 = vsyncadd (%p2092_p5), [#allocation7], 4294966656  ;;  %1575 = vmatprep.subr.mxu0 %v1809_v1  ;;  %1577 = vmatprep.mubr.msk.f32.mxu0 %vm1810_vm0, %v1809_v1  ;;  %s280_s14 = sld [smem:[#allocation3 + %s1513_s19]]  ;;  %s287_s18 = sadd.s32 1, %s1513_s19  ;;  %v399_v19 = vld [vmem:[#allocation8] sm:$0xff]  ;;  %v638_v30 = vld [vmem:[#allocation8 + $0x8] sm:$0xff] }
  0x66   : > { %v276_v2 = vshrl.u32 %v275_v0, 7  ;;  %s288_s25 = sld [smem:[#allocation3 + %s287_s18]]  ;;  %s295_s15 = sadd.s32 2, %s1513_s19  ;;  %1580 = vmatprep.subr.mxu1 %v1809_v1  ;;  %1582 = vmatprep.mubr.msk.f32.mxu1 %vm1810_vm0, %v1809_v1  ;;  %v278_v3 = vand.u32 127, %v275_v0  ;;  %v320_v20 = vld [vmem:[#allocation6] sm:$0x1f] }
  0x67   : > { %s296_s17 = sld [smem:[#allocation3 + %s295_s15]]  ;;  %s303_s20 = sadd.s32 3, %s1513_s19  ;;  %1576 = vmatpush3.msk.msra.mxu0 %vm325_vm1, %v319_v4  ;;  %1581 = vmatpush3.msra.mxu1 %v399_v19  ;;  %v1516_v24 = vld [vmem:[%s2079_s4] ss:$0 sm:$0xff]  ;;  %v1523_v35 = vld [vmem:[%s2079_s4 + $0x1] ss:$0 sm:$0xff] }
  0x68   : > { %s304_s13 = sld [smem:[#allocation3 + %s303_s20]]  ;;  %s311_s21 = sadd.s32 4, %s1513_s19  ;;  %vm281_vm2 = vcmp.eq.s32.totalorder %v276_v2, 0  ;;  %vm289_vm3 = vcmp.eq.s32.totalorder %v276_v2, 1  ;;  %vm297_vm5 = vcmp.eq.s32.totalorder %v276_v2, 2  ;;  %vm305_vm8 = vcmp.eq.s32.totalorder %v276_v2, 3  ;;  %1585 = vmatprep.subr.mxu0 %v1809_v1  ;;  %1590 = vmatprep.subr.mxu1 %v1809_v1 }
  0x69   : > { %s312_s22 = sld [smem:[#allocation3 + %s311_s21]]  ;;  %vm313_vm11 = vcmp.eq.s32.totalorder %v276_v2, 4  ;;  %s1811_s26 = smov 120   ;;  %v875_v41 = vld [vmem:[#allocation8 + $0x10] sm:$0xff]  ;;  %v1112_v52 = vld [vmem:[#allocation8 + $0x18] sm:$0xff] }
  0x6a   : > { %s1812_s27 = smov 112   ;;  %v1530_v46 = vld [vmem:[%s2079_s4 + $0x2] ss:$0 sm:$0xff]  ;;  %v1537_v57 = vld [vmem:[%s2079_s4 + $0x3] ss:$0 sm:$0xff]  ;;  %p271_p8 = scmp.lt.s32.totalorder %s1871_s12, 7 }
  0x6b   : > { %v282_v5 = vstv %s280_s14  ;;  %v1348_v63 = vld [vmem:[%s2080_s5] sm:$0xff] }
  0x6c   : > { %vm283_vm4 = vcmp.eq.s32.totalorder %v278_v3, %v282_v5  ;;  %v290_v6 = vstv %s288_s25  ;;  %s2094_s12 = smov (!%p271_p8, %s1871_s12), 7 }
  0x6d   : > { %vm284_vm6 = vmand %vm281_vm2, %vm283_vm4  ;;  %vm291_vm7 = vcmp.eq.s32.totalorder %v278_v3, %v290_v6  ;;  %v298_v7 = vstv %s296_s17  ;;  %vm321_vm2 = vcmask 48128   ;;  %vm564_vm4 = vcmask 1044480   ;;  %s1512_s19 = sshll.u32 %s2094_s12, 3 }
  0x6e   : > { %v285_v8 = vsel %vm284_vm6, 1.0, %v1809_v1  ;;  %vm292_vm9 = vmand %vm289_vm3, %vm291_vm7  ;;  %vm299_vm10 = vcmp.eq.s32.totalorder %v278_v3, %v298_v7  ;;  %v306_v9 = vstv %s304_s13  ;;  %vm407_vm3 = vcmask 64512   ;;  %s274_s17 = scalar_lea.vmem %s2082_s7, %s1512_s19 }
  0x6f   : > { %v293_v10 = vsel %vm292_vm9, 1.0, %v1809_v1  ;;  %vm300_vm12 = vmand %vm297_vm5, %vm299_vm10  ;;  %vm307_vm13 = vcmp.eq.s32.totalorder %v278_v3, %v306_v9  ;;  %v314_v11 = vstv %s312_s22  ;;  %vm560_vm5 = vcmask 39936  }
  0x70   : > { %v294_v12 = vadd.f32 %v293_v10, %v285_v8  ;;  %v301_v13 = vsel %vm300_vm12, 1.0, %v1809_v1  ;;  %vm308_vm14 = vmand %vm305_vm8, %vm307_vm13  ;;  %vm315_vm15 = vcmp.eq.s32.totalorder %v278_v3, %v314_v11 }
  0x71   : > { %v309_v14 = vsel %vm308_vm14, 1.0, %v1809_v1  ;;  %vm316_vm1 = vmand %vm313_vm11, %vm315_vm15 }
  0x72   : > { %v302_v15 = vadd.f32 %v301_v13, %v294_v12  ;;  %v317_v16 = vsel %vm316_vm1, 1.0, %v1809_v1 }
  0x74   : > { %v310_v17 = vadd.f32 %v309_v14, %v302_v15 }
  0x76   : > { %v318_v18 = vadd.f32 %v317_v16, %v310_v17 }
  0x78   : > { %1578 = vmatmul.mubr.msk.f32.vlgmr.msra.gmra.mrb[0].mxu0 %vm321_vm2, %v318_v18 }
  0x79   : > { %1587 = vmatprep.mubr.msk.f32.mxu0 %vm1810_vm0, %v1809_v1 }
 0x14b   : > { %v395_v21 = vpop.f32.mrb[0].mxu0 }
 0x14c   : > { %v396_v22 = vadd.f32 %v395_v21, %v320_v20  ;;  %v1579_v23 = vpop.f32.mrb[1].mxu0 }
 0x14e   : > { %1583 = vmatmul.mubr.msk.f32.vlgmr.msra.gmra.mrb[0].mxu1 %vm407_vm3, %v396_v22 }
 0x14f   : > { %1592 = vmatprep.mubr.msk.f32.mxu1 %vm1810_vm0, %v1809_v1 }
 0x221   : > { %v477_v25 = vpop.f32.mrb[0].mxu1 }
 0x222   : > { %v478_v26 = vadd.f32 %v1516_v24, %v477_v25  ;;  %v1584_v27 = vpop.f32.mrb[1].mxu1 }
 0x224   : > { %482 = vrot.lane.b32.xlu0 %v478_v26, %s1811_s26 }
 0x228   : > { %558 = vrot.lane.b32.xlu0 %v478_v26, %s1812_s27 }
 0x296   : > { %v483_v28 = vpop.permute.xlu0 %482 }
 0x297   : > { %1586 = vmatpush3.xpose.msk.msra.mxu0 %vm407_vm3, %v483_v28 }
 0x298   : > { %1595 = vmatprep.subr.mxu0 %v1809_v1 }
 0x29a   : > { %1588 = vmatmul.mubr.msk.f32.vlgmr.msra.gmra.mrb[2].mxu0 %vm407_vm3, %v478_v26  ;;  %v559_v29 = vpop.permute.xlu0 %558 }
 0x29b   : > { %1591 = vmatpush3.msk.msra.mxu1 %vm564_vm4, %v559_v29  ;;  %1597 = vmatprep.mubr.msk.f32.mxu0 %vm1810_vm0, %v1809_v1 }
 0x29c   : > { %1600 = vmatprep.subr.mxu1 %v1809_v1  ;;  %1596 = vmatpush3.msra.mxu0 %v638_v30 }
 0x29d   : > { %1605 = vmatprep.subr.mxu0 %v1809_v1 }
 0x36d   : > { %v554_v31 = vpop.f32.mrb[2].mxu0 }
 0x36e   : > { %v1589_v32 = vpop.f32.mrb[3].mxu0  ;;  %1593 = vmatmul.mubr.msk.f32.vlgmr.msra.gmra.mrb[2].mxu1 %vm560_vm5, %v554_v31 }
 0x36f   : > { %1602 = vmatprep.mubr.msk.f32.mxu1 %vm1810_vm0, %v1809_v1 }
 0x441   : > { %v633_v33 = vpop.f32.mrb[2].mxu1 }
 0x442   : > { %v1594_v34 = vpop.f32.mrb[3].mxu1  ;;  %1598 = vmatmul.mubr.msk.f32.vlgmr.msra.gmra.mrb[4].mxu0 %vm407_vm3, %v633_v33 }
 0x443   : > { %1607 = vmatprep.mubr.msk.f32.mxu0 %vm1810_vm0, %v1809_v1 }
 0x515   : > { %v716_v36 = vpop.f32.mrb[4].mxu0 }
 0x516   : > { %v717_v37 = vadd.f32 %v1523_v35, %v716_v36  ;;  %v1599_v38 = vpop.f32.mrb[5].mxu0 }
 0x518   : > { %721 = vrot.lane.b32.xlu1 %v717_v37, %s1811_s26 }
 0x51c   : > { %797 = vrot.lane.b32.xlu1 %v717_v37, %s1812_s27 }
 0x58a   : > { %v722_v39 = vpop.permute.xlu1 %721 }
 0x58b   : > { %1601 = vmatpush3.xpose.msk.msra.mxu1 %vm407_vm3, %v722_v39 }
 0x58c   : > { %1610 = vmatprep.subr.mxu1 %v1809_v1 }
 0x58e   : > { %1603 = vmatmul.mubr.msk.f32.vlgmr.msra.gmra.mrb[4].mxu1 %vm407_vm3, %v717_v37  ;;  %v798_v40 = vpop.permute.xlu1 %797 }
 0x58f   : > { %1606 = vmatpush3.msk.msra.mxu0 %vm564_vm4, %v798_v40  ;;  %1612 = vmatprep.mubr.msk.f32.mxu1 %vm1810_vm0, %v1809_v1 }
 0x590   : > { %1615 = vmatprep.subr.mxu0 %v1809_v1  ;;  %1611 = vmatpush3.msra.mxu1 %v875_v41 }
 0x591   : > { %1620 = vmatprep.subr.mxu1 %v1809_v1 }
 0x661   : > { %v793_v42 = vpop.f32.mrb[4].mxu1 }
 0x662   : > { %v1604_v43 = vpop.f32.mrb[5].mxu1  ;;  %1608 = vmatmul.mubr.msk.f32.vlgmr.msra.gmra.mrb[6].mxu0 %vm560_vm5, %v793_v42 }
 0x663   : > { %1617 = vmatprep.mubr.msk.f32.mxu0 %vm1810_vm0, %v1809_v1 }
 0x735   : > { %v870_v44 = vpop.f32.mrb[6].mxu0 }
 0x736   : > { %v1609_v45 = vpop.f32.mrb[7].mxu0  ;;  %1613 = vmatmul.mubr.msk.f32.vlgmr.msra.gmra.mrb[6].mxu1 %vm407_vm3, %v870_v44 }
 0x737   : > { %1622 = vmatprep.mubr.msk.f32.mxu1 %vm1810_vm0, %v1809_v1 }
 0x809   : > { %v953_v47 = vpop.f32.mrb[6].mxu1 }
 0x80a   : > { %v954_v48 = vadd.f32 %v1530_v46, %v953_v47  ;;  %v1614_v49 = vpop.f32.mrb[7].mxu1 }
 0x80c   : > { %1034 = vrot.lane.b32.xlu1 %v954_v48, %s1812_s27  ;;  %958 = vrot.lane.b32.xlu0 %v954_v48, %s1811_s26 }
 0x87e   : > { %v1035_v50 = vpop.permute.xlu1 %1034  ;;  %v959_v51 = vpop.permute.xlu0 %958 }
 0x87f   : > { %1616 = vmatpush3.xpose.msk.msra.mxu0 %vm407_vm3, %v959_v51  ;;  %1621 = vmatpush3.msk.msra.mxu1 %vm564_vm4, %v1035_v50 }
 0x880   : > { %1625 = vmatprep.subr.mxu0 %v1809_v1  ;;  %1630 = vmatprep.subr.mxu1 %v1809_v1 }
 0x882   : > { %1618 = vmatmul.mubr.msk.f32.vlgmr.msra.gmra.mrb[8].mxu0 %vm407_vm3, %v954_v48 }
 0x883   : > { %1627 = vmatprep.mubr.msk.f32.mxu0 %vm1810_vm0, %v1809_v1  ;;  %1626 = vmatpush3.msra.mxu0 %v1112_v52 }
 0x884   : > { %1635 = vmatprep.subr.mxu0 %v1809_v1 }
 0x955   : > { %v1030_v53 = vpop.f32.mrb[8].mxu0 }
 0x956   : > { %v1619_v54 = vpop.f32.mrb[9].mxu0  ;;  %1623 = vmatmul.mubr.msk.f32.vlgmr.msra.gmra.mrb[8].mxu1 %vm560_vm5, %v1030_v53 }
 0x957   : > { %1632 = vmatprep.mubr.msk.f32.mxu1 %vm1810_vm0, %v1809_v1 }
 0xa29   : > { %v1107_v55 = vpop.f32.mrb[8].mxu1 }
 0xa2a   : > { %v1624_v56 = vpop.f32.mrb[9].mxu1  ;;  %1628 = vmatmul.mubr.msk.f32.vlgmr.msra.gmra.mrb[10].mxu0 %vm407_vm3, %v1107_v55 }
 0xa2b   : > { %1637 = vmatprep.mubr.msk.f32.mxu0 %vm1810_vm0, %v1809_v1 }
 0xafd   : > { %v1190_v58 = vpop.f32.mrb[10].mxu0 }
 0xafe   : > { %v1191_v59 = vadd.f32 %v1537_v57, %v1190_v58  ;;  %v1629_v60 = vpop.f32.mrb[11].mxu0 }
 0xb00   : > { %1271 = vrot.lane.b32.xlu1 %v1191_v59, %s1812_s27  ;;  %1195 = vrot.lane.b32.xlu0 %v1191_v59, %s1811_s26 }
 0xb72   : > { %v1272_v61 = vpop.permute.xlu1 %1271  ;;  %v1196_v62 = vpop.permute.xlu0 %1195 }
 0xb73   : > { %1631 = vmatpush3.xpose.msk.msra.mxu1 %vm407_vm3, %v1196_v62  ;;  %1636 = vmatpush3.msk.msra.mxu0 %vm564_vm4, %v1272_v61 }
 0xb74   : > { %1640 = vmatprep.subr.mxu1 %v1809_v1 }
 0xb76   : > { %1633 = vmatmul.mubr.msk.f32.vlgmr.msra.gmra.mrb[10].mxu1 %vm407_vm3, %v1191_v59 }
 0xb77   : > { %1642 = vmatprep.mubr.msk.f32.mxu1 %vm1810_vm0, %v1809_v1  ;;  %1641 = vmatpush3.msra.mxu1 %v1348_v63  ;;  %v1543_v1 = vld [vmem:[%s2081_s6] ss:$0 sm:$0xff] }
 0xc49   : > { %v1267_v0 = vpop.f32.mrb[10].mxu1 }
 0xc4a   : > { %v1634_v2 = vpop.f32.mrb[11].mxu1  ;;  %1638 = vmatmul.mubr.msk.f32.vlgmr.msra.gmra.mrb[12].mxu0 %vm560_vm5, %v1267_v0 }
 0xd1d   : > { %v1344_v3 = vpop.f32.mrb[12].mxu0 }
 0xd1e   : > { %v1639_v4 = vpop.f32.mrb[13].mxu0  ;;  %1643 = vmatmul.mubr.msk.f32.vlgmr.msra.gmra.mrb[12].mxu1 %vm407_vm3, %v1344_v3 }
 0xdf1   : > { %v1425_v5 = vpop.f32.mrb[12].mxu1 }
 0xdf2   : > { %v1426_v6 = vadd.f32 %v1543_v1, %v1425_v5  ;;  %v1644_v7 = vpop.f32.mrb[13].mxu1 }
 0xdf4   : > { %1429 = vst [vmem:[%s274_s17] sm:$0x1f] %v1426_v6 }
 0xdf5 PF: > { %s23_s11 = sadd.s32 1, %s1801_s11  }
 0xdf6   : > { %p20_p6 = scmp.ge.s32.totalorder %s23_s11, 10  }
 0xdf8   :  { %22 = sbr.rel (!%p20_p6) target bundleno = 14 (0xe), region = 90 }
 0xdff   :  { %1449 = vsyncpa [#allocation5], 1 }
 0xe00   :  { %1451 = vsyncpa [#allocation5 + $0x1], 1 }
 0xe01   :  { %1452 = vsyncpa [#allocation7], 1 }

</bundles_post_ra>
